<compile_context>
chip_gen: v6e
topology: v6e:2x2x1
jax: 0.10.0
libtpu: 0.0.40
codegen_flags: <defaults>
</compile_context>

<pallas_src>
import jax
import jax.numpy as jnp
from jax.experimental import pallas as pl
from jax.experimental.pallas import tpu as pltpu


def _round_up(a, b):
    return (a + b - 1) // b * b


def rgcn_layer_with_skip(x, h, edge_index, edge_type, edge_weight,
                         w_skip, b_skip, w_rel, w_root, b_conv,
                         *, tile_dst=256, tile_src=512):
    """x:(N,Fs)  h:(N,Fi)  edge_index:(2,E)  edge_type:(E,)  edge_weight:(E,).

    w_skip:(Fo,Fs)  b_skip:(Fo,)  w_rel:(R,Fi,Fo)  w_root:(Fi,Fo)  b_conv:(Fo,)
    """
    N, Fs = x.shape
    _, Fi = h.shape
    R, _, Fo = w_rel.shape

    LANE = 128
    SUB_BF16 = 16                                   # bf16 packs 16 rows / vreg
    Fo_pad = _round_up(Fo, LANE)                    # lane-dense output columns

    # Generation-tunable tiles (defaults sized for v7x 64 MiB VMEM; v6e can use
    # ~512 x 2048; v5e keep dst >= 128 to fill its 128-wide MXU).
    tm = tile_dst if N > tile_dst else _round_up(N, SUB_BF16)   # dst rows/tile
    tk = tile_src if N > tile_src else _round_up(N, LANE)       # src rows/tile
    Np_d = _round_up(N, tm)                         # padded dst rows
    Np_s = _round_up(N, tk)                         # padded src rows
    Np_h = max(Np_d, Np_s)                          # h indexed by both tilings
    n_i, n_k = Np_d // tm, Np_s // tk

    if edge_weight is None:
        edge_weight = jnp.ones((edge_index.shape[1],), jnp.float32)

    # --- glue: weighted per-relation adjacency, scattered directly in the
    #     kernel layout (R, dst, src); no transpose pass over the big array ---
    src, dst = edge_index[0], edge_index[1]
    adj = jnp.zeros((R, N, N), jnp.float32)
    adj = adj.at[edge_type, dst, src].add(edge_weight.astype(jnp.float32))
    adj = jnp.pad(adj, ((0, 0), (0, Np_d - N), (0, Np_s - N))).astype(jnp.bfloat16)

    # --- node features: separate refs, bf16, sublane-pack aligned rows -------
    x_p = jnp.pad(x.astype(jnp.bfloat16), ((0, Np_d - N), (0, 0)))
    h_p = jnp.pad(h.astype(jnp.bfloat16), ((0, Np_h - N), (0, 0)))

    # --- weights: skip/root lane-padded; relation weights stacked along lanes
    #     so the per-src-tile message slab is a single MXU call ---------------
    wskip_p = jnp.zeros((Fs, Fo_pad), jnp.bfloat16).at[:, :Fo].set(
        w_skip.T.astype(jnp.bfloat16))
    wroot_p = jnp.zeros((Fi, Fo_pad), jnp.bfloat16).at[:, :Fo].set(
        w_root.astype(jnp.bfloat16))
    wmsg_p = jnp.zeros((R, Fi, Fo_pad), jnp.float32).at[:, :, :Fo].set(w_rel)
    wmsg_p = jnp.transpose(wmsg_p, (1, 0, 2)).reshape(Fi, R * Fo_pad)  # tiny
    wmsg_p = wmsg_p.astype(jnp.bfloat16)

    def kernel(x_ref, hd_ref, hs_ref, wskip_ref, wroot_ref, wmsg_ref, adj_ref,
               out_ref, acc_ref):
        k = pl.program_id(1)

        # Seed the accumulator with the dense (skip + root) term at k == 0.
        @pl.when(k == 0)
        def _():
            acc_ref[...] = (
                jnp.dot(x_ref[...], wskip_ref[...],
                        preferred_element_type=jnp.float32)
                + jnp.dot(hd_ref[...], wroot_ref[...],
                          preferred_element_type=jnp.float32))

        # Per-src-tile relation messages: (tk, Fi) @ (Fi, R*Fo_pad) in one
        # lane-dense MXU call.  Recomputed per dst tile: extra MXU work is only
        # ~Fi/tm of the adjacency dot, and it avoids a second pallas_call plus
        # an HBM round trip of the message slab.
        msgs = jnp.dot(hs_ref[...], wmsg_ref[...],
                       preferred_element_type=jnp.float32).astype(jnp.bfloat16)

        # sum_r A_r[dst_tile, src_tile] @ (h_src @ W_r): R accumulating dots
        # against contiguous (tm, tk) relation planes -- no sublane restack.
        acc = acc_ref[...]
        for r in range(R):
            acc += jnp.dot(adj_ref[r], msgs[:, r * Fo_pad:(r + 1) * Fo_pad],
                           preferred_element_type=jnp.float32)
        acc_ref[...] = acc

        @pl.when(k == pl.num_programs(1) - 1)
        def _():
            out_ref[...] = acc_ref[...]

    grid_spec = pltpu.PrefetchScalarGridSpec(
        num_scalar_prefetch=0,
        grid=(n_i, n_k),                                   # reduction axis last
        in_specs=[
            pl.BlockSpec((tm, Fs), lambda i, k: (i, 0)),         # x   (dst rows)
            pl.BlockSpec((tm, Fi), lambda i, k: (i, 0)),         # h   (dst rows)
            pl.BlockSpec((tk, Fi), lambda i, k: (k, 0)),         # h   (src rows)
            pl.BlockSpec((Fs, Fo_pad), lambda i, k: (0, 0)),     # W_skip^T
            pl.BlockSpec((Fi, Fo_pad), lambda i, k: (0, 0)),     # W_root
            pl.BlockSpec((Fi, R * Fo_pad), lambda i, k: (0, 0)), # W_rel slab
            pl.BlockSpec((R, tm, tk), lambda i, k: (0, i, k)),   # adjacency
        ],
        out_specs=pl.BlockSpec((tm, Fo_pad), lambda i, k: (i, 0)),
        scratch_shapes=[pltpu.VMEM((tm, Fo_pad), jnp.float32)],
    )

    # VMEM budget: double-buffered input streams + resident weights + acc/out.
    vmem_need = (
        2 * R * tm * tk * 2                            # adjacency blocks (bf16)
        + 2 * (tm * Fs + tm * Fi + tk * Fi) * 2        # x / h_dst / h_src blocks
        + (Fs + Fi + R * Fi) * Fo_pad * 2              # resident weight slabs
        + 3 * tm * Fo_pad * 4)                         # f32 acc + out buffers
    compiler_params = pltpu.CompilerParams(
        # dst tiles are independent (megacore on v7x); src is the reduction.
        dimension_semantics=("parallel", "arbitrary"),
        # Explicit scoped-VMEM limit: v5e default is only 16 MiB; cap at 64 MiB
        # so the same setting is legal on v7x.
        vmem_limit_bytes=int(min(max(4 * vmem_need, 32 << 20), 64 << 20)),
    )

    flops = (2 * Np_d * (Fs + Fi) * Fo_pad              # dense skip + root
             + n_i * 2 * Np_s * Fi * R * Fo_pad         # message slabs
             + 2 * Np_d * Np_s * R * Fo_pad)            # adjacency contraction
    bytes_accessed = (adj.size + x_p.size + 2 * h_p.size
                      + wskip_p.size + wroot_p.size + wmsg_p.size) * 2 \
                     + Np_d * Fo_pad * 4

    out = pl.pallas_call(
        kernel,
        out_shape=jax.ShapeDtypeStruct((Np_d, Fo_pad), jnp.float32),
        grid_spec=grid_spec,
        compiler_params=compiler_params,
        cost_estimate=pl.CostEstimate(flops=int(flops), transcendentals=0,
                                      bytes_accessed=int(bytes_accessed)),
    )(x_p, h_p, h_p, wskip_p, wroot_p, wmsg_p, adj)

    # Bias added once here (kept out of the kernel: frees a ref and a per-step
    # broadcast add), then slice away the lane/row padding.
    return out[:N, :Fo] + (b_skip + b_conv)[None, :]


def _reference(x, h, edge_index, edge_type, edge_weight,
               w_skip, b_skip, w_rel, w_root, b_conv):
    """Pure-JAX f32 reference for the same semantics."""
    skip = x @ w_skip.T + b_skip
    out = h @ w_root + b_conv
    src, dst = edge_index[0], edge_index[1]
    per_edge = jnp.einsum("ei,eio->eo", h[src], w_rel[edge_type]) * edge_weight[:, None]
    out = out.at[dst].add(per_edge)
    return out + skip


if __name__ == "__main__":
    key = jax.random.PRNGKey(0)
    ks = jax.random.split(key, 10)

    # Small shapes consistent with the module.
    N = 16                 # number of graph nodes
    E = 40                 # number of edges
    skip_in_channels = 16
    in_channels = 32
    out_channels = 32
    num_relations = 3

    x = jax.random.normal(ks[0], (N, skip_in_channels), jnp.float32)
    h = jax.random.normal(ks[1], (N, in_channels), jnp.float32)
    src = jax.random.randint(ks[2], (E,), 0, N)
    dst = jax.random.randint(ks[3], (E,), 0, N)
    edge_index = jnp.stack([src, dst], axis=0)
    edge_type = jax.random.randint(ks[4], (E,), 0, num_relations)
    edge_weight = jax.random.uniform(ks[5], (E,), jnp.float32, 0.1, 1.0)

    # Deterministic parameter init (mirrors module __init__ shapes).
    w_skip = 0.1 * jax.random.normal(ks[6], (out_channels, skip_in_channels), jnp.float32)
    b_skip = 0.1 * jax.random.normal(ks[7], (out_channels,), jnp.float32)
    w_rel = 0.1 * jax.random.normal(ks[8], (num_relations, in_channels, out_channels), jnp.float32)
    w_root = 0.1 * jax.random.normal(ks[9], (in_channels, out_channels), jnp.float32)
    b_conv = jnp.zeros((out_channels,), jnp.float32)

    out = rgcn_layer_with_skip(x, h, edge_index, edge_type, edge_weight,
                               w_skip, b_skip, w_rel, w_root, b_conv)
    out = jax.block_until_ready(out)

    ref = _reference(x, h, edge_index, edge_type, edge_weight,
                     w_skip, b_skip, w_rel, w_root, b_conv)
    assert out.shape == (N, out_channels)
    # bf16 MXU operands with f32 accumulation => tolerance loosened vs f32 ref.
    assert jnp.allclose(out, ref, atol=3e-2, rtol=3e-2)

    print("KERNEL_OK")
</pallas_src>

<mosaic_0001>
module attributes {stable_mosaic.version = 11 : i64} {
  func.func @kernel(%arg0: i32, %arg1: i32, %arg2: memref<16x16xbf16, #tpu.memory_space<vmem>>, %arg3: memref<16x32xbf16, #tpu.memory_space<vmem>>, %arg4: memref<128x32xbf16, #tpu.memory_space<vmem>>, %arg5: memref<16x128xbf16, #tpu.memory_space<vmem>>, %arg6: memref<32x128xbf16, #tpu.memory_space<vmem>>, %arg7: memref<32x384xbf16, #tpu.memory_space<vmem>>, %arg8: memref<3x16x128xbf16, #tpu.memory_space<vmem>>, %arg9: memref<16x128xf32, #tpu.memory_space<vmem>>, %arg10: memref<16x128xf32, #tpu.memory_space<vmem>>) attributes {dimension_semantics = [#tpu.dimension_semantics<parallel>, #tpu.dimension_semantics<arbitrary>], iteration_bounds = array<i64: 1, 1>, scalar_prefetch = 0 : i64, scratch_operands = 1 : i64, tpu.core_type = #tpu.core_type<tc>, window_params = [{transform_indices = @transform_0, window_bounds = array<i64: 16, 16>}, {transform_indices = @transform_1, window_bounds = array<i64: 16, 32>}, {transform_indices = @transform_2, window_bounds = array<i64: 128, 32>}, {pipeline_mode = #tpu.pipeline_mode<synchronous>, transform_indices = @transform_3, window_bounds = array<i64: 16, 128>}, {pipeline_mode = #tpu.pipeline_mode<synchronous>, transform_indices = @transform_4, window_bounds = array<i64: 32, 128>}, {pipeline_mode = #tpu.pipeline_mode<synchronous>, transform_indices = @transform_5, window_bounds = array<i64: 32, 384>}, {transform_indices = @transform_6, window_bounds = array<i64: 3, 16, 128>}, {transform_indices = @transform_7, window_bounds = array<i64: 16, 128>}]} {
    %c0_i32 = arith.constant 0 : i32
    %0 = arith.cmpi eq, %arg1, %c0_i32 : i32
    %1 = arith.extui %0 : i1 to i32
    %c0_i32_0 = arith.constant 0 : i32
    %2 = arith.cmpi ne, %1, %c0_i32_0 : i32
    scf.if %2 {
      %c0_20 = arith.constant 0 : index
      %c0_21 = arith.constant 0 : index
      %27 = vector.load %arg2[%c0_20, %c0_21] : memref<16x16xbf16, #tpu.memory_space<vmem>>, vector<16x16xbf16>
      %c0_22 = arith.constant 0 : index
      %c0_23 = arith.constant 0 : index
      %28 = vector.load %arg5[%c0_22, %c0_23] : memref<16x128xbf16, #tpu.memory_space<vmem>>, vector<16x128xbf16>
      %cst_24 = arith.constant dense<0.000000e+00> : vector<16x128xf32>
      %29 = tpu.matmul %27, %28, %cst_24 {dimension_numbers = #tpu.dot_dimension_numbers<[1], [0], [0], [1], [0, 0, 1, 1], [], []>} : vector<16x16xbf16>, vector<16x128xbf16>, vector<16x128xf32> -> vector<16x128xf32>
      %c0_25 = arith.constant 0 : index
      %c0_26 = arith.constant 0 : index
      %30 = vector.load %arg3[%c0_25, %c0_26] : memref<16x32xbf16, #tpu.memory_space<vmem>>, vector<16x32xbf16>
      %c0_27 = arith.constant 0 : index
      %c0_28 = arith.constant 0 : index
      %31 = vector.load %arg6[%c0_27, %c0_28] : memref<32x128xbf16, #tpu.memory_space<vmem>>, vector<32x128xbf16>
      %cst_29 = arith.constant dense<0.000000e+00> : vector<16x128xf32>
      %32 = tpu.matmul %30, %31, %cst_29 {dimension_numbers = #tpu.dot_dimension_numbers<[1], [0], [0], [1], [0, 0, 1, 1], [], []>} : vector<16x32xbf16>, vector<32x128xbf16>, vector<16x128xf32> -> vector<16x128xf32>
      %33 = arith.addf %29, %32 : vector<16x128xf32>
      %c0_30 = arith.constant 0 : index
      %c0_31 = arith.constant 0 : index
      %34 = vector.load %arg10[%c0_30, %c0_31] : memref<16x128xf32, #tpu.memory_space<vmem>>, vector<16x128xf32>
      tpu.vector_store %arg10[%c0_30, %c0_31], %33 {strides = array<i32>} : memref<16x128xf32, #tpu.memory_space<vmem>>, vector<16x128xf32>,
    } else {
    }
    %c0 = arith.constant 0 : index
    %c0_1 = arith.constant 0 : index
    %3 = vector.load %arg4[%c0, %c0_1] : memref<128x32xbf16, #tpu.memory_space<vmem>>, vector<128x32xbf16>
    %c0_2 = arith.constant 0 : index
    %c0_3 = arith.constant 0 : index
    %4 = vector.load %arg7[%c0_2, %c0_3] : memref<32x384xbf16, #tpu.memory_space<vmem>>, vector<32x384xbf16>
    %cst = arith.constant dense<0.000000e+00> : vector<128x384xf32>
    %5 = tpu.matmul %3, %4, %cst {dimension_numbers = #tpu.dot_dimension_numbers<[1], [0], [0], [1], [0, 0, 1, 1], [], []>} : vector<128x32xbf16>, vector<32x384xbf16>, vector<128x384xf32> -> vector<128x384xf32>
    %6 = arith.truncf %5 : vector<128x384xf32> to vector<128x384xbf16>
    %c0_4 = arith.constant 0 : index
    %c0_5 = arith.constant 0 : index
    %7 = vector.load %arg10[%c0_4, %c0_5] : memref<16x128xf32, #tpu.memory_space<vmem>>, vector<16x128xf32>
    %c0_6 = arith.constant 0 : index
    %c0_7 = arith.constant 0 : index
    %c0_8 = arith.constant 0 : index
    %8 = vector.load %arg8[%c0_6, %c0_7, %c0_8] : memref<3x16x128xbf16, #tpu.memory_space<vmem>>, vector<1x16x128xbf16>
    %9 = vector.shape_cast %8 : vector<1x16x128xbf16> to vector<16x128xbf16>
    %10 = vector.extract_strided_slice %6 {offsets = [0, 0], sizes = [128, 128], strides = [1, 1]} : vector<128x384xbf16> to vector<128x128xbf16>
    %cst_9 = arith.constant dense<0.000000e+00> : vector<16x128xf32>
    %11 = tpu.matmul %9, %10, %cst_9 {dimension_numbers = #tpu.dot_dimension_numbers<[1], [0], [0], [1], [0, 0, 1, 1], [], []>} : vector<16x128xbf16>, vector<128x128xbf16>, vector<16x128xf32> -> vector<16x128xf32>
    %12 = arith.addf %7, %11 : vector<16x128xf32>
    %c1 = arith.constant 1 : index
    %c0_10 = arith.constant 0 : index
    %c0_11 = arith.constant 0 : index
    %13 = vector.load %arg8[%c1, %c0_10, %c0_11] : memref<3x16x128xbf16, #tpu.memory_space<vmem>>, vector<1x16x128xbf16>
    %14 = vector.shape_cast %13 : vector<1x16x128xbf16> to vector<16x128xbf16>
    %15 = vector.extract_strided_slice %6 {offsets = [0, 128], sizes = [128, 128], strides = [1, 1]} : vector<128x384xbf16> to vector<128x128xbf16>
    %cst_12 = arith.constant dense<0.000000e+00> : vector<16x128xf32>
    %16 = tpu.matmul %14, %15, %cst_12 {dimension_numbers = #tpu.dot_dimension_numbers<[1], [0], [0], [1], [0, 0, 1, 1], [], []>} : vector<16x128xbf16>, vector<128x128xbf16>, vector<16x128xf32> -> vector<16x128xf32>
    %17 = arith.addf %12, %16 : vector<16x128xf32>
    %c2 = arith.constant 2 : index
    %c0_13 = arith.constant 0 : index
    %c0_14 = arith.constant 0 : index
    %18 = vector.load %arg8[%c2, %c0_13, %c0_14] : memref<3x16x128xbf16, #tpu.memory_space<vmem>>, vector<1x16x128xbf16>
    %19 = vector.shape_cast %18 : vector<1x16x128xbf16> to vector<16x128xbf16>
    %20 = vector.extract_strided_slice %6 {offsets = [0, 256], sizes = [128, 128], strides = [1, 1]} : vector<128x384xbf16> to vector<128x128xbf16>
    %cst_15 = arith.constant dense<0.000000e+00> : vector<16x128xf32>
    %21 = tpu.matmul %19, %20, %cst_15 {dimension_numbers = #tpu.dot_dimension_numbers<[1], [0], [0], [1], [0, 0, 1, 1], [], []>} : vector<16x128xbf16>, vector<128x128xbf16>, vector<16x128xf32> -> vector<16x128xf32>
    %22 = arith.addf %17, %21 : vector<16x128xf32>
    %c0_16 = arith.constant 0 : index
    %c0_17 = arith.constant 0 : index
    %23 = vector.load %arg10[%c0_16, %c0_17] : memref<16x128xf32, #tpu.memory_space<vmem>>, vector<16x128xf32>
    tpu.vector_store %arg10[%c0_16, %c0_17], %22 {strides = array<i32>} : memref<16x128xf32, #tpu.memory_space<vmem>>, vector<16x128xf32>,
    %c0_i32_18 = arith.constant 0 : i32
    %24 = arith.cmpi eq, %arg1, %c0_i32_18 : i32
    %25 = arith.extui %24 : i1 to i32
    %c0_i32_19 = arith.constant 0 : i32
    %26 = arith.cmpi ne, %25, %c0_i32_19 : i32
    scf.if %26 {
      %c0_20 = arith.constant 0 : index
      %c0_21 = arith.constant 0 : index
      %27 = vector.load %arg10[%c0_20, %c0_21] : memref<16x128xf32, #tpu.memory_space<vmem>>, vector<16x128xf32>
      %c0_22 = arith.constant 0 : index
      %c0_23 = arith.constant 0 : index
      %28 = vector.load %arg9[%c0_22, %c0_23] : memref<16x128xf32, #tpu.memory_space<vmem>>, vector<16x128xf32>
      tpu.vector_store %arg9[%c0_22, %c0_23], %27 {strides = array<i32>} : memref<16x128xf32, #tpu.memory_space<vmem>>, vector<16x128xf32>,
    } else {
    }
    return
  }
  func.func @transform_0(%arg0: i32, %arg1: i32) -> (i32, i32) {
    %c0_i32 = arith.constant 0 : i32
    %c0_i32_0 = arith.constant 0 : i32
    return %arg0, %c0_i32 : i32, i32
  }
  func.func @transform_1(%arg0: i32, %arg1: i32) -> (i32, i32) {
    %c0_i32 = arith.constant 0 : i32
    %c0_i32_0 = arith.constant 0 : i32
    return %arg0, %c0_i32 : i32, i32
  }
  func.func @transform_2(%arg0: i32, %arg1: i32) -> (i32, i32) {
    %c0_i32 = arith.constant 0 : i32
    %c0_i32_0 = arith.constant 0 : i32
    return %arg1, %c0_i32 : i32, i32
  }
  func.func @transform_3(%arg0: i32, %arg1: i32) -> (i32, i32) {
    %c0_i32 = arith.constant 0 : i32
    %c0_i32_0 = arith.constant 0 : i32
    %c0_i32_1 = arith.constant 0 : i32
    return %c0_i32, %c0_i32_0 : i32, i32
  }
  func.func @transform_4(%arg0: i32, %arg1: i32) -> (i32, i32) {
    %c0_i32 = arith.constant 0 : i32
    %c0_i32_0 = arith.constant 0 : i32
    %c0_i32_1 = arith.constant 0 : i32
    return %c0_i32, %c0_i32_0 : i32, i32
  }
  func.func @transform_5(%arg0: i32, %arg1: i32) -> (i32, i32) {
    %c0_i32 = arith.constant 0 : i32
    %c0_i32_0 = arith.constant 0 : i32
    %c0_i32_1 = arith.constant 0 : i32
    return %c0_i32, %c0_i32_0 : i32, i32
  }
  func.func @transform_6(%arg0: i32, %arg1: i32) -> (i32, i32, i32) {
    %c0_i32 = arith.constant 0 : i32
    %c0_i32_0 = arith.constant 0 : i32
    return %c0_i32, %arg0, %arg1 : i32, i32, i32
  }
  func.func @transform_7(%arg0: i32, %arg1: i32) -> (i32, i32) {
    %c0_i32 = arith.constant 0 : i32
    %c0_i32_0 = arith.constant 0 : i32
    return %arg0, %c0_i32 : i32, i32
  }
}

</mosaic_0001>

<bundles_post_ra>
// kernel: tpu_custom_call.1
= control target key start
LH: loop header
LB: loop body
LE: loop exit
PB: predicated region body
PF: predicated region fallthrough
CT: control target
= control target key end

     0   :  { %v931_v1 = vmov 0.0   ;;  %vm932_vm0 = vmmov 0   ;;  %vm115_vm1 = vcmask 130048   ;;  %vm59_vm2 = vcmask 261120   ;;  %s1178_s0 = inlined_call_operand.vmem [shape: bf16[16,16], index: 0, kind: input, shape index: {}]   ;;  %s1179_s1 = inlined_call_operand.vmem [shape: bf16[128,32], index: 1, kind: input, shape index: {}]   ;;  %s1180_s2 = inlined_call_operand.vmem [shape: bf16[128,32], index: 2, kind: input, shape index: {}]   ;;  %s1181_s3 = inlined_call_operand.vmem [shape: bf16[16,128], index: 3, kind: input, shape index: {}]   ;;  %s1182_s4 = inlined_call_operand.vmem [shape: bf16[32,128], index: 4, kind: input, shape index: {}]   ;;  %s1183_s5 = inlined_call_operand.vmem [shape: bf16[32,384], index: 5, kind: input, shape index: {}]   ;;  %s1184_s6 = inlined_call_operand.vmem [shape: bf16[3,16,128], index: 6, kind: input, shape index: {}]   ;;  %s1185_s7 = inlined_call_operand.hbm [shape: f32[16,128], index: 7, kind: output, shape index: {}]  }
   0x1   :  { %v885_v0 = vld [vmem:[%s1182_s4 + $0x8] sm:$0xff]   ;;  %785 = vmatprep.subr.bf16.mxu0 %v931_v1  ;;  %793 = vmatprep.subr.bf16.mxu1 %v931_v1  ;;  %v886_v2 = vld [vmem:[%s1181_s3] sm:$0xff]   ;;  %v933_v10 = vmov 0  }
   0x2   :  { %786 = vmatpush3.bf16.msra.mxu0 %v885_v0  ;;  %795 = vmatprep.mubr.msk.bf16.mxu1 %vm932_vm0, %v931_v1  ;;  %v887_v3 = vld [vmem:[%s1178_s0] sm:$0xff]   ;;  %v890_v5 = vld [vmem:[%s1183_s5 + $0x1c] ss:$12 sps:$4 sm:$0xff]  }
   0x3   :  { %794 = vmatpush3.bf16.msra.mxu1 %v886_v2  ;;  %787 = vmatprep.subr.bf16.mxu0 %v931_v1  ;;  %v888_v4 = vld [vmem:[%s1183_s5 + $0x18] ss:$12 sps:$4 sm:$0xff]   ;;  %v893_v8 = vld [vmem:[%s1183_s5] ss:$12 sps:$4 sm:$0xff]   ;;  %v905_v14 = vld [vmem:[%s1183_s5 + $0x8] ss:$12 sps:$4 sm:$0xff]  }
   0x4   :  { %789 = vmatprep.mubr.msk.bf16.mxu0 %vm932_vm0, %v931_v1  ;;  %v891_v6 = vld [vmem:[%s1182_s4] sm:$0xff]   ;;  %295 = vmatprep.subr.bf16.mxu1 %v890_v5  ;;  %v897_v13 = vld [vmem:[%s1180_s2 + $0x8] sm:$0xff]  }
   0x5   :  { %v892_v7 = vld [vmem:[%s1179_s1] sm:$0xff]  }
   0x6   :  { %796 = vmatmul.mubr.msk.bf16.vlgmr.msra.gmra.mxu1 %vm115_vm1, %v887_v3  ;;  %788 = vmatpush3.bf16.msra.mxu0 %v891_v6  ;;  %v895_v9 = vld [vmem:[%s1183_s5 + $0x4] ss:$12 sps:$4 sm:$0xff]   ;;  %v903_v12 = vld [vmem:[%s1183_s5 + $0x20] ss:$12 sps:$4 sm:$0xff]  }
   0x7   :  { %296 = vmatpush1.bf16.msra.mxu1 %v888_v4  ;;  %315 = vmatprep.mubr.bf16.mxu1 %v933_v10  ;;  %v896_v11 = vld [vmem:[%s1180_s2] sm:$0xff]  }
   0x8   :  { %297 = vmatprep.subr.bf16.mxu1 %v895_v9  ;;  %799 = vmatprep.subr.bf16.mxu0 %v903_v12 }
   0x9   :  { %790 = vmatmul.mubr.msk.bf16.vlgmr.msra.gmra.mxu0 %vm59_vm2, %v892_v7 }
   0xa   :  { %803 = vmatprep.mubr.msk.bf16.mxu0 %vm59_vm2, %v896_v11  ;;  %800 = vmatpush3.bf16.msra.mxu0 %v903_v12 }
   0xb   :  { %298 = vmatpush1.bf16.msra.mxu1 %v893_v8  ;;  %801 = vmatprep.subr.bf16.mxu0 %v905_v14 }
   0xc   :  { %839 = vmatprep.subr.bf16.mxu1 %v931_v1 }
   0xe   :  { %720 = vmatmul.mubr.msk.bf16.vlgmr.msra.gmra.mxu1 %vm59_vm2, %v896_v11 }
   0xf   :  { %325 = vmatprep.mubr.bf16.mxu1 %v933_v10 }
  0x10   :  { %12 = vsyncpa [#allocation4], 0  ;;  %802 = vmatpush3.bf16.msra.mxu0 %v905_v14  ;;  %v898_v15 = vld [vmem:[%s1180_s2 + $0x10] sm:$0xff]   ;;  %v899_v16 = vld [vmem:[%s1180_s2 + $0x18] sm:$0xff]   ;;  %s934_s14 = smov [#allocation3]  }
  0x11   :  { %819 = vmatprep.subr.bf16.mxu0 %v931_v1  ;;  %v900_v17 = vld [vmem:[%s1180_s2 + $0x20] sm:$0xff]   ;;  %v901_v18 = vld [vmem:[%s1180_s2 + $0x28] sm:$0xff]   ;;  %v902_v19 = vld [vmem:[%s1180_s2 + $0x30] sm:$0xff]   ;;  %s688_s15 = sshll.u32 %s934_s14, 4  ;;  %s689_s15 = int_to_ptr.vmem [resolvable:$true] %s688_s15 }
  0x12   :  { %v904_v20 = vld [vmem:[%s1180_s2 + $0x38] sm:$0xff]   ;;  %p914_p1 = scmp.lt.s32.totalorder %s689_s15, %s689_s15 }
  0x13   :  { %804 = vmatmul.mubr.msk.bf16.vlgmr.msra.gmra.mxu0 %vm59_vm2, %v897_v13 }
  0x14   :  { %807 = vmatprep.mubr.msk.bf16.mxu0 %vm59_vm2, %v898_v15 }
  0x16   :  { %721 = vmatmul.mubr.msk.bf16.gmra.mxu1 %vm59_vm2, %v897_v13 }
  0x17   :  { %335 = vmatprep.mubr.bf16.mxu1 %v933_v10 }
  0x1b   :  { %808 = vmatmul.mubr.msk.bf16.gmra.mxu0 %vm59_vm2, %v899_v16 }
  0x1c   :  { %811 = vmatprep.mubr.msk.bf16.mxu0 %vm59_vm2, %v900_v17 }
  0x1e   :  { %722 = vmatmul.mubr.msk.bf16.gmra.mxu1 %vm59_vm2, %v898_v15 }
  0x1f   :  { %345 = vmatprep.mubr.bf16.mxu1 %v933_v10 }
  0x23   :  { %812 = vmatmul.mubr.msk.bf16.gmra.mxu0 %vm59_vm2, %v901_v18 }
  0x24   :  { %815 = vmatprep.mubr.msk.bf16.mxu0 %vm59_vm2, %v902_v19 }
  0x26   :  { %723 = vmatmul.mubr.msk.bf16.gmra.mxu1 %vm59_vm2, %v899_v16 }
  0x27   :  { %355 = vmatprep.mubr.bf16.mxu1 %v933_v10 }
  0x2b   :  { %816 = vmatmul.mubr.msk.bf16.gmra.mxu0 %vm59_vm2, %v904_v20 }
  0x2c   :  { %835 = vmatprep.mubr.msk.bf16.mxu0 %vm932_vm0, %v931_v1 }
  0x2e   :  { %724 = vmatmul.mubr.msk.bf16.gmra.mxu1 %vm59_vm2, %v900_v17 }
  0x2f   :  { %365 = vmatprep.mubr.bf16.mxu1 %v933_v10 }
  0x36   :  { %725 = vmatmul.mubr.msk.bf16.gmra.mxu1 %vm59_vm2, %v901_v18 }
  0x37   :  { %375 = vmatprep.mubr.bf16.mxu1 %v933_v10 }
  0x3e   :  { %726 = vmatmul.mubr.msk.bf16.gmra.mxu1 %vm59_vm2, %v902_v19 }
  0x3f   :  { %385 = vmatprep.mubr.bf16.mxu1 %v933_v10 }
  0x46   :  { %727 = vmatmul.mubr.msk.bf16.gmra.mxu1 %vm59_vm2, %v904_v20 }
  0x47   :  { %855 = vmatprep.mubr.msk.bf16.mxu1 %vm932_vm0, %v931_v1 }
  0xc6   :  { %v153_v21 = vpop.f32.mrf.mxu1 }
  0xc8   :  { %v797_v22 = vpop.f32.mrf.mxu1 }
  0xc9   :  { %v97_v23 = vpop.f32.mrf.mxu0 }
  0xca   :  { %v156_v24 = vpop.f32.mrf.mxu1  ;;  %v1064_v25 = vadd.f32 %v153_v21, %v97_v23 }
  0xcb   :  { %v791_v26 = vpop.f32.mrf.mxu0 }
  0xcc   :  { %v798_v27 = vpop.f32.mrf.mxu1 }
  0xcd   :  { %v100_v28 = vpop.f32.mrf.mxu0 }
  0xce   :  { %v1066_v29 = vpop.f32.mrf.mxu1  ;;  %v1068_v30 = vadd.f32 %v156_v24, %v100_v28 }
  0xcf   :  { %v792_v32 = vpop.f32.mrf.mxu0 }
  0xd0   :  { %v1070_v31 = vpop.f32.mrf.mxu1 }
  0xd2   :  { %v1072_v33 = vpop.f32.mrf.mxu1 }
  0xd3   :  { %v493_v34 = vpack.c.bf16 %v1072_v33, %v1066_v29  ;;  %v1100_v53 = vpop.f32.mrf.mxu0 }
  0xd4   :  { %v1076_v35 = vpop.f32.mrf.mxu1 }
  0xd5   :  { %v494_v36 = vpack.c.bf16 %v1076_v35, %v1070_v31  ;;  %v1102_v56 = vpop.f32.mrf.mxu0 }
  0xd6   :  { %v1080_v37 = vpop.f32.mrf.mxu1 }
  0xd7   :  { %v1104_v59 = vpop.f32.mrf.mxu0 }
  0xd8   :  { %v1082_v38 = vpop.f32.mrf.mxu1 }
  0xd9   :  { %v1106_v62 = vpop.f32.mrf.mxu0 }
  0xda   :  { %v1084_v39 = vpop.f32.mrf.mxu1 }
  0xdb   :  { %v496_v40 = vpack.c.bf16 %v1084_v39, %v1080_v37  ;;  %v1108_v2 = vpop.f32.mrf.mxu0  ;;  %v907_v37 = vld [vmem:[%s1184_s6 + $0x8] sm:$0xff]  }
  0xdc   :  { %v1088_v41 = vpop.f32.mrf.mxu1 }
  0xdd   :  { %v497_v42 = vpack.c.bf16 %v1088_v41, %v1082_v38  ;;  %v1110_v5 = vpop.f32.mrf.mxu0  ;;  %v908_v41 = vld [vmem:[%s1184_s6 + $0x10] sm:$0xff]  }
  0xde   :  { %v1092_v43 = vpop.f32.mrf.mxu1 }
  0xdf   :  { %v1112_v8 = vpop.f32.mrf.mxu0 }
  0xe0   :  { %v1094_v44 = vpop.f32.mrf.mxu1  ;;  %v504_v31 = vpack.c.bf16 %v1112_v8, %v1108_v2 }
  0xe1   :  { %v1114_v12 = vpop.f32.mrf.mxu0 }
  0xe2   :  { %v1096_v45 = vpop.f32.mrf.mxu1  ;;  %v501_v35 = vpack.c.bf16 %v1114_v12, %v1110_v5 }
  0xe3   :  { %v813_v15 = vpop.f32.mrf.mxu0  ;;  %v499_v27 = vpack.c.bf16 %v1096_v45, %v1092_v43 }
  0xe4   :  { %v1098_v46 = vpop.f32.mrf.mxu1 }
  0xe5   :  { %v462_v18 = vpop.f32.mrf.mxu0  ;;  %v500_v32 = vpack.c.bf16 %v1098_v46, %v1094_v44  ;;  %v906_v44 = vld [vmem:[%s1184_s6] sm:$0xff]   ;;  %s909_s6 = scalar_lea.vmem %s689_s15, 256 }
  0xe6   :  { %v347_v47 = vpop.f32.mrf.mxu1  ;;  %p910_p0 = scmp.ne.s32.totalorder %s689_s15, %s909_s6  ;;  %p915_p2 = scmp.lt.s32.totalorder %s909_s6, %s909_s6 }
  0xe7   :  { %v814_v21 = vpop.f32.mrf.mxu0 }
  0xe8   :  { %v349_v48 = vpop.f32.mrf.mxu1  ;;  %v510_v33 = vpack.c.bf16 %v814_v21, %v813_v15  ;;  %p916_p3 = por %p915_p2, %p914_p1 }
  0xe9   :  { %v465_v24 = vpop.f32.mrf.mxu0 }
  0xea   :  { %v351_v49 = vpop.f32.mrf.mxu1  ;;  %p917_p4 = pnand %p916_p3, %p910_p0 }
  0xeb   :  { %v502_v23 = vpack.c.bf16 %v351_v49, %v347_v47  ;;  %v817_v28 = vpop.f32.mrf.mxu0 }
  0xec   :  { %v353_v50 = vpop.f32.mrf.mxu1 }
  0xed   :  { %v503_v26 = vpack.c.bf16 %v353_v50, %v349_v48  ;;  %v478_v47 = vpop.f32.mrf.mxu0 }
  0xee   :  { %v357_v51 = vpop.f32.mrf.mxu1 }
  0xef   :  { %v818_v43 = vpop.f32.mrf.mxu0 }
  0xf0   :  { %v359_v52 = vpop.f32.mrf.mxu1  ;;  %v516_v39 = vpack.c.bf16 %v818_v43, %v817_v28 }
  0xf1   :  { %v481_v38 = vpop.f32.mrf.mxu0 }
  0xf2   :  { %v361_v54 = vpop.f32.mrf.mxu1  ;;  %v513_v29 = vpack.c.bf16 %v481_v38, %v478_v47 }
  0xf3   :  { %v505_v20 = vpack.c.bf16 %v361_v54, %v357_v51 }
  0xf4   :  { %v363_v55 = vpop.f32.mrf.mxu1 }
  0xf5   :  { %v506_v22 = vpack.c.bf16 %v363_v55, %v359_v52 }
  0xf6   :  { %v367_v57 = vpop.f32.mrf.mxu1 }
  0xf8   :  { %v369_v58 = vpop.f32.mrf.mxu1 }
  0xfa   :  { %v371_v60 = vpop.f32.mrf.mxu1 }
  0xfb   :  { %v508_v17 = vpack.c.bf16 %v371_v60, %v367_v57 }
  0xfc   :  { %v373_v61 = vpop.f32.mrf.mxu1 }
  0xfd   :  { %v509_v19 = vpack.c.bf16 %v373_v61, %v369_v58 }
  0xfe   :  { %v377_v63 = vpop.f32.mrf.mxu1 }
 0x100   :  { %v379_v0 = vpop.f32.mrf.mxu1 }
 0x102   :  { %v381_v3 = vpop.f32.mrf.mxu1 }
 0x103   :  { %v511_v14 = vpack.c.bf16 %v381_v3, %v377_v63 }
 0x104   :  { %v383_v4 = vpop.f32.mrf.mxu1 }
 0x105   :  { %v512_v16 = vpack.c.bf16 %v383_v4, %v379_v0 }
 0x106   :  { %v387_v6 = vpop.f32.mrf.mxu1 }
 0x108   :  { %v389_v7 = vpop.f32.mrf.mxu1 }
 0x10a   :  { %v391_v9 = vpop.f32.mrf.mxu1 }
 0x10b   :  { %v514_v10 = vpack.c.bf16 %v391_v9, %v387_v6 }
 0x10c   :  { %v393_v11 = vpop.f32.mrf.mxu1 }
 0x10d   :  { %v515_v13 = vpack.c.bf16 %v393_v11, %v389_v7  ;;  %820 = vmatpush3.bf16.msra.mxu0 %v514_v10 }
 0x10e   :  { %821 = vmatprep.subr.bf16.mxu0 %v931_v1 }
 0x10f   :  { %840 = vmatpush3.bf16.msra.mxu1 %v515_v13 }
 0x110   :  { %841 = vmatprep.subr.bf16.mxu1 %v931_v1 }
 0x111   :  { %822 = vmatpush3.bf16.msra.mxu0 %v511_v14 }
 0x112   :  { %823 = vmatprep.subr.bf16.mxu0 %v931_v1 }
 0x113   :  { %842 = vmatpush3.bf16.msra.mxu1 %v512_v16 }
 0x114   :  { %843 = vmatprep.subr.bf16.mxu1 %v931_v1 }
 0x115   :  { %824 = vmatpush3.bf16.msra.mxu0 %v508_v17 }
 0x116   :  { %825 = vmatprep.subr.bf16.mxu0 %v931_v1 }
 0x117   :  { %844 = vmatpush3.bf16.msra.mxu1 %v509_v19 }
 0x118   :  { %845 = vmatprep.subr.bf16.mxu1 %v931_v1 }
 0x119   :  { %826 = vmatpush3.bf16.msra.mxu0 %v505_v20 }
 0x11a   :  { %827 = vmatprep.subr.bf16.mxu0 %v931_v1 }
 0x11b   :  { %846 = vmatpush3.bf16.msra.mxu1 %v506_v22 }
 0x11c   :  { %847 = vmatprep.subr.bf16.mxu1 %v931_v1 }
 0x11d   :  { %828 = vmatpush3.bf16.msra.mxu0 %v502_v23 }
 0x11e   :  { %829 = vmatprep.subr.bf16.mxu0 %v931_v1 }
 0x11f   :  { %848 = vmatpush3.bf16.msra.mxu1 %v503_v26 }
 0x120   :  { %849 = vmatprep.subr.bf16.mxu1 %v931_v1 }
 0x121   :  { %830 = vmatpush3.bf16.msra.mxu0 %v499_v27 }
 0x122   :  { %831 = vmatprep.subr.bf16.mxu0 %v931_v1 }
 0x123   :  { %850 = vmatpush3.bf16.msra.mxu1 %v500_v32 }
 0x124   :  { %851 = vmatprep.subr.bf16.mxu1 %v931_v1 }
 0x125   :  { %832 = vmatpush3.bf16.msra.mxu0 %v496_v40  ;;  %v495_v40 = vpack.c.bf16 %v1106_v62, %v1102_v56 }
 0x126   :  { %833 = vmatprep.subr.bf16.mxu0 %v931_v1 }
 0x127   :  { %852 = vmatpush3.bf16.msra.mxu1 %v497_v42 }
 0x128   :  { %853 = vmatprep.subr.bf16.mxu1 %v931_v1 }
 0x129   :  { %834 = vmatpush3.bf16.msra.mxu0 %v493_v34  ;;  %v507_v34 = vpack.c.bf16 %v465_v24, %v462_v18 }
 0x12a   :  { %859 = vmatprep.subr.bf16.mxu0 %v931_v1 }
 0x12b   :  { %854 = vmatpush3.bf16.msra.mxu1 %v494_v36  ;;  %v498_v36 = vpack.c.bf16 %v1104_v59, %v1100_v53 }
 0x12c   :  { %836 = vmatmul.mubr.bf16.vlgmr.msra.gmra.mxu0 %v906_v44 }
 0x12d   :  { %860 = vmatpush3.bf16.msra.mxu0 %v516_v39  ;;  %875 = vmatprep.mubr.msk.bf16.mxu0 %vm932_vm0, %v931_v1 }
 0x12e   :  { %856 = vmatmul.mubr.bf16.vlgmr.msra.gmra.mxu1 %v907_v37  ;;  %861 = vmatprep.subr.bf16.mxu0 %v931_v1 }
 0x131   :  { %862 = vmatpush3.bf16.msra.mxu0 %v513_v29 }
 0x132   :  { %863 = vmatprep.subr.bf16.mxu0 %v931_v1 }
 0x135   :  { %864 = vmatpush3.bf16.msra.mxu0 %v510_v33 }
 0x136   :  { %865 = vmatprep.subr.bf16.mxu0 %v931_v1 }
 0x139   :  { %866 = vmatpush3.bf16.msra.mxu0 %v507_v34 }
 0x13a   :  { %867 = vmatprep.subr.bf16.mxu0 %v931_v1 }
 0x13d   :  { %868 = vmatpush3.bf16.msra.mxu0 %v504_v31 }
 0x13e   :  { %869 = vmatprep.subr.bf16.mxu0 %v931_v1 }
 0x141   :  { %870 = vmatpush3.bf16.msra.mxu0 %v501_v35 }
 0x142   :  { %871 = vmatprep.subr.bf16.mxu0 %v931_v1 }
 0x145   :  { %872 = vmatpush3.bf16.msra.mxu0 %v498_v36 }
 0x146   :  { %873 = vmatprep.subr.bf16.mxu0 %v931_v1 }
 0x149   :  { %874 = vmatpush3.bf16.msra.mxu0 %v495_v40 }
 0x14c   :  { %876 = vmatmul.mubr.bf16.vlgmr.msra.gmra.mxu0 %v908_v41 }
 0x1ec   :  { %v561_v42 = vpop.f32.mrf.mxu0 }
 0x1ed   :  { %v568_v53 = vadd.f32 %v561_v42, %v1064_v25 }
 0x1ee   :  { %v837_v45 = vpop.f32.mrf.mxu0  ;;  %v613_v46 = vpop.f32.mrf.mxu1 }
 0x1ef   :  { %v620_v1 = vadd.f32 %v613_v46, %v568_v53 }
 0x1f0   :  { %v564_v48 = vpop.f32.mrf.mxu0  ;;  %v857_v49 = vpop.f32.mrf.mxu1 }
 0x1f1   :  { %v569_v54 = vadd.f32 %v564_v48, %v1068_v30 }
 0x1f2   :  { %v838_v50 = vpop.f32.mrf.mxu0  ;;  %v616_v51 = vpop.f32.mrf.mxu1 }
 0x1f3   :  { %v621_v58 = vadd.f32 %v616_v51, %v569_v54 }
 0x1f4   :  { %v858_v52 = vpop.f32.mrf.mxu1 }
 0x20c   :  { %v665_v55 = vpop.f32.mrf.mxu0 }
 0x20d   :  { %v672_v56 = vadd.f32 %v665_v55, %v620_v1 }
 0x20e   :  { %v877_v57 = vpop.f32.mrf.mxu0 }
 0x20f   :  { %681 = vst [vmem:[#allocation3] sm:$0xff] %v672_v56 }
 0x210   :  { %v668_v59 = vpop.f32.mrf.mxu0 }
 0x211   :  { %v673_v60 = vadd.f32 %v668_v59, %v621_v58 }
 0x212   :  { %v878_v61 = vpop.f32.mrf.mxu0 }
 0x213   :  { %682 = vst [vmem:[#allocation3 + $0x8] sm:$0xff] %v673_v60 }
 0x214   :  { %920 = shalt.err (!%p917_p4)
}
 0x215   :  { %s935_s16 = smov 128   ;;  %s936_s4 = smov 8  }
 0x216   :  { %694 = dma.vmem_to_hbm [thread:$0]  %s689_s15, 256, %s1185_s7, [#allocation4], %s935_s16, %s935_s16, %s936_s4  }
 0x217   :  { %929 = dma.done.wait [#allocation4], 256  }
 0x218   :  { %930 = vsyncadd [#allocation4], 4294967040 }
 0x219   :  { %698 = vsyncpa [#allocation4], 1 }

</bundles_post_ra>
